<compile_context>
chip_gen: v7x
topology: tpu7x:2x2x1
jax: 0.10.0
libtpu: 0.0.40
codegen_flags: <defaults>
</compile_context>

<pallas_src>
import functools

import jax
import jax.numpy as jnp
from jax import lax
from jax.experimental import pallas as pl
from jax.experimental.pallas import tpu as pltpu


def _sdpa_flash_kernel(q_ref, k_ref, v_ref, o_ref, q_sc, m_sc, l_sc, acc_sc,
                       *, scale, bkv, n_valid, mask_kv_tail, bf16_exp):
    # q_ref: (bq, D) bf16   k_ref/v_ref: (bkv, D) bf16   o_ref: (bq, D) f32
    # scratch: q_sc (bq, D) bf16 (scaled Q, built once per q tile),
    #          m_sc/l_sc (bq, 1) f32, acc_sc (bq, D) f32 (resident across kv).
    kv = pl.program_id(1)

    @pl.when(kv == 0)
    def _init():
        q = q_ref[...]
        if scale != 1.0:                       # static Python check
            q = (q * scale).astype(jnp.bfloat16)
        q_sc[...] = q
        m_sc[...] = jnp.full_like(m_sc, -jnp.inf)
        l_sc[...] = jnp.zeros_like(l_sc)
        acc_sc[...] = jnp.zeros_like(acc_sc)

    # scores = q @ k^T without transposing K: contract D on both operands.
    s = lax.dot_general(
        q_sc[...], k_ref[...],
        dimension_numbers=(((1,), (1,)), ((), ())),
        preferred_element_type=jnp.float32,
    )  # (bq, bkv) f32

    if mask_kv_tail:
        col = kv * bkv + lax.broadcasted_iota(jnp.int32, s.shape, 1)
        s = jnp.where(col < n_valid, s, -jnp.inf)

    # Online (flash) softmax update.
    m_prev = m_sc[...]
    m_new = jnp.maximum(m_prev, jnp.max(s, axis=-1, keepdims=True))
    alpha = jnp.exp(m_prev - m_new)            # 0 at the first kv step
    if bf16_exp:
        # bf16 EUP (v6e/v7x): half-width exp; p feeds the MXU directly.
        p = jnp.exp((s - m_new).astype(jnp.bfloat16))
        row_sum = jnp.sum(p, axis=-1, keepdims=True, dtype=jnp.float32)
    else:
        p_f32 = jnp.exp(s - m_new)
        row_sum = jnp.sum(p_f32, axis=-1, keepdims=True)
        p = p_f32.astype(jnp.bfloat16)
    l_sc[...] = alpha * l_sc[...] + row_sum
    acc_sc[...] = alpha * acc_sc[...] + jnp.dot(
        p, v_ref[...], preferred_element_type=jnp.float32)
    m_sc[...] = m_new

    @pl.when(kv == pl.num_programs(1) - 1)
    def _finalize():
        o_ref[...] = (acc_sc[...] *
                      pl.reciprocal(l_sc[...], approx=True)).astype(o_ref.dtype)


def _pick_block(n, preferred, min_tiles=1):
    """Tile size along a sequence axis: a multiple of 128 (or the full axis
    for tiny inputs), optionally capped so at least `min_tiles` tiles exist."""
    if n <= 128:
        return n                                   # full-extent block
    b = max(128, (min(preferred, n) // 128) * 128)
    if min_tiles > 1:
        b = min(b, max(128, (n // (min_tiles * 128)) * 128))
    return b


def _has_bf16_eup():
    # bf16 transcendentals exist on v6e / v7x; v5e (and older) do not.
    try:
        kind = jax.devices()[0].device_kind.lower()
    except Exception:
        return False
    return ("v6" in kind) or ("v7" in kind)


def scaled_dot_product_attention(query, key, value, inv_scale,
                                 block_q=512, block_kv=1024, bf16_exp=None):
    """query/key/value: (N, 1, D). inv_scale: Python scalar (scores /= inv_scale)."""
    # glue: same as tensor.squeeze(1)
    q = jnp.squeeze(query, axis=1)
    k = jnp.squeeze(key, axis=1)
    v = jnp.squeeze(value, axis=1)
    n, d = q.shape
    out_dtype = q.dtype

    scale = 1.0 / float(inv_scale)        # folded into Q once per q tile in-kernel
    if bf16_exp is None:
        bf16_exp = _has_bf16_eup()

    bq = _pick_block(n, block_q, min_tiles=2)   # >=2 q tiles when N allows (v7x)
    bkv = _pick_block(n, block_kv)
    n_q = pl.cdiv(n, bq) * bq
    n_kv = pl.cdiv(n, bkv) * bkv

    # HBM-resident operands in bf16 (K/V are re-read once per q tile); pad to
    # block multiples -- padded kv columns are masked to -inf inside the kernel.
    q_b = q.astype(jnp.bfloat16)
    k_b = k.astype(jnp.bfloat16)
    v_b = v.astype(jnp.bfloat16)
    if n_q != n:
        q_b = jnp.pad(q_b, ((0, n_q - n), (0, 0)))
    if n_kv != n:
        k_b = jnp.pad(k_b, ((0, n_kv - n), (0, 0)))
        v_b = jnp.pad(v_b, ((0, n_kv - n), (0, 0)))

    grid = (n_q // bq, n_kv // bkv)

    kernel = functools.partial(
        _sdpa_flash_kernel, scale=scale, bkv=bkv, n_valid=n,
        mask_kv_tail=(n_kv != n), bf16_exp=bf16_exp)

    cost = pl.CostEstimate(
        flops=4 * n_q * n_kv * d,                        # QK^T + PV
        transcendentals=n_q * n_kv,                       # exp
        bytes_accessed=(2 * n_q * d                       # Q (bf16) read once
                        + 2 * 2 * n_kv * d * grid[0]      # K,V (bf16) per q tile
                        + 4 * n_q * d),                   # O (f32) written once
    )

    grid_spec = pltpu.PrefetchScalarGridSpec(
        num_scalar_prefetch=0,
        grid=grid,
        in_specs=[
            pl.BlockSpec((bq, d), lambda qi, ki: (qi, 0)),    # Q tile
            pl.BlockSpec((bkv, d), lambda qi, ki: (ki, 0)),   # K tile
            pl.BlockSpec((bkv, d), lambda qi, ki: (ki, 0)),   # V tile
        ],
        out_specs=pl.BlockSpec((bq, d), lambda qi, ki: (qi, 0)),
        scratch_shapes=[
            pltpu.VMEM((bq, d), jnp.bfloat16),   # scaled Q (built once per q tile)
            pltpu.VMEM((bq, 1), jnp.float32),    # running max  m
            pltpu.VMEM((bq, 1), jnp.float32),    # running sum  l
            pltpu.VMEM((bq, d), jnp.float32),    # output accumulator
        ],
    )

    out = pl.pallas_call(
        kernel,
        out_shape=jax.ShapeDtypeStruct((n_q, d), out_dtype),
        grid_spec=grid_spec,
        compiler_params=pltpu.CompilerParams(
            dimension_semantics=("parallel", "arbitrary")),
        cost_estimate=cost,
    )(q_b, k_b, v_b)

    return out[:n] if n_q != n else out


def _reference(query, key, value, inv_scale):
    q = jnp.squeeze(query, axis=1)
    k = jnp.squeeze(key, axis=1)
    v = jnp.squeeze(value, axis=1)
    s = (q @ k.T) / inv_scale
    p = jax.nn.softmax(s, axis=-1)
    return p @ v


if __name__ == "__main__":
    D = 256  # hidden size from the PyTorch spec (randn(1, 1, 256))
    rng = jax.random.PRNGKey(0)
    kq, kk, kv_, k2 = jax.random.split(rng, 4)

    # --- Test 1: spec-like shapes (N=8 rows, D=256), inv_scale=1 -------------
    N = 8
    query = jax.random.normal(kq, (N, 1, D), dtype=jnp.float32)
    key_t = jax.random.normal(kk, (N, 1, D), dtype=jnp.float32)
    value = jax.random.normal(kv_, (N, 1, D), dtype=jnp.float32)
    out = jax.block_until_ready(
        scaled_dot_product_attention(query, key_t, value, 1.0))
    ref = _reference(query, key_t, value, 1.0)
    assert out.shape == ref.shape, (out.shape, ref.shape)
    # bf16 MXU operands with unscaled logits (inv_scale=1 -> |scores| ~ tens)
    # => loose absolute tolerance vs the pure-f32 reference.
    err1 = float(jnp.max(jnp.abs(out - ref)))
    assert err1 < 1e-1, f"test1 mismatch: max abs err {err1}"

    # --- Test 2: multi-tile online-softmax path (grid = (2, 2)) --------------
    N2 = 256
    kq2, kk2, kv2, k3 = jax.random.split(k2, 4)
    q2 = jax.random.normal(kq2, (N2, 1, D), dtype=jnp.float32)
    key2 = jax.random.normal(kk2, (N2, 1, D), dtype=jnp.float32)
    v2 = jax.random.normal(kv2, (N2, 1, D), dtype=jnp.float32)
    inv_scale2 = float(D) ** 0.5  # O(1) logits -> tight tolerance check
    out2 = jax.block_until_ready(
        scaled_dot_product_attention(q2, key2, v2, inv_scale2,
                                     block_q=128, block_kv=128))
    ref2 = _reference(q2, key2, v2, inv_scale2)
    err2 = float(jnp.max(jnp.abs(out2 - ref2)))
    assert err2 < 2e-2, f"test2 mismatch: max abs err {err2}"

    # --- Test 3: non-divisible N -> padded + masked kv-tail path -------------
    N3 = 200
    kq3, kk3, kv3 = jax.random.split(k3, 3)
    q3 = jax.random.normal(kq3, (N3, 1, D), dtype=jnp.float32)
    key3 = jax.random.normal(kk3, (N3, 1, D), dtype=jnp.float32)
    v3 = jax.random.normal(kv3, (N3, 1, D), dtype=jnp.float32)
    out3 = jax.block_until_ready(
        scaled_dot_product_attention(q3, key3, v3, float(D) ** 0.5))
    ref3 = _reference(q3, key3, v3, float(D) ** 0.5)
    assert out3.shape == ref3.shape, (out3.shape, ref3.shape)
    err3 = float(jnp.max(jnp.abs(out3 - ref3)))
    assert err3 < 2e-2, f"test3 mismatch: max abs err {err3}"

    print("KERNEL_OK")
</pallas_src>

<mosaic_0001>
module attributes {stable_mosaic.version = 11 : i64} {
  func.func @_sdpa_flash_kernel(%arg0: i32, %arg1: i32, %arg2: memref<8x256xbf16, #tpu.memory_space<vmem>>, %arg3: memref<8x256xbf16, #tpu.memory_space<vmem>>, %arg4: memref<8x256xbf16, #tpu.memory_space<vmem>>, %arg5: memref<8x256xf32, #tpu.memory_space<vmem>>, %arg6: memref<8x256xbf16, #tpu.memory_space<vmem>>, %arg7: memref<8x1xf32, #tpu.memory_space<vmem>>, %arg8: memref<8x1xf32, #tpu.memory_space<vmem>>, %arg9: memref<8x256xf32, #tpu.memory_space<vmem>>) attributes {dimension_semantics = [#tpu.dimension_semantics<parallel>, #tpu.dimension_semantics<arbitrary>], iteration_bounds = array<i64: 1, 1>, scalar_prefetch = 0 : i64, scratch_operands = 4 : i64, tpu.core_type = #tpu.core_type<tc>, window_params = [{transform_indices = @transform_0, window_bounds = array<i64: 8, 256>}, {transform_indices = @transform_1, window_bounds = array<i64: 8, 256>}, {transform_indices = @transform_2, window_bounds = array<i64: 8, 256>}, {transform_indices = @transform_3, window_bounds = array<i64: 8, 256>}]} {
    %c0_i32 = arith.constant 0 : i32
    %0 = arith.cmpi eq, %arg1, %c0_i32 : i32
    %1 = arith.extui %0 : i1 to i32
    %c0_i32_0 = arith.constant 0 : i32
    %2 = arith.cmpi ne, %1, %c0_i32_0 : i32
    scf.if %2 {
      %c0_23 = arith.constant 0 : index
      %c0_24 = arith.constant 0 : index
      %33 = vector.load %arg2[%c0_23, %c0_24] : memref<8x256xbf16, #tpu.memory_space<vmem>>, vector<8x256xbf16>
      %c0_25 = arith.constant 0 : index
      %c0_26 = arith.constant 0 : index
      %34 = vector.load %arg6[%c0_25, %c0_26] : memref<8x256xbf16, #tpu.memory_space<vmem>>, vector<8x256xbf16>
      tpu.vector_store %arg6[%c0_25, %c0_26], %33 {strides = array<i32>} : memref<8x256xbf16, #tpu.memory_space<vmem>>, vector<8x256xbf16>,
      %cst_27 = arith.constant 0xFF800000 : f32
      %35 = vector.broadcast %cst_27 : f32 to vector<8x1xf32>
      %c0_28 = arith.constant 0 : index
      %c0_29 = arith.constant 0 : index
      %36 = vector.load %arg7[%c0_28, %c0_29] : memref<8x1xf32, #tpu.memory_space<vmem>>, vector<8x1xf32>
      tpu.vector_store %arg7[%c0_28, %c0_29], %35 {strides = array<i32>} : memref<8x1xf32, #tpu.memory_space<vmem>>, vector<8x1xf32>,
      %cst_30 = arith.constant 0.000000e+00 : f32
      %37 = vector.broadcast %cst_30 : f32 to vector<8x1xf32>
      %c0_31 = arith.constant 0 : index
      %c0_32 = arith.constant 0 : index
      %38 = vector.load %arg8[%c0_31, %c0_32] : memref<8x1xf32, #tpu.memory_space<vmem>>, vector<8x1xf32>
      tpu.vector_store %arg8[%c0_31, %c0_32], %37 {strides = array<i32>} : memref<8x1xf32, #tpu.memory_space<vmem>>, vector<8x1xf32>,
      %cst_33 = arith.constant 0.000000e+00 : f32
      %39 = vector.broadcast %cst_33 : f32 to vector<8x256xf32>
      %c0_34 = arith.constant 0 : index
      %c0_35 = arith.constant 0 : index
      %40 = vector.load %arg9[%c0_34, %c0_35] : memref<8x256xf32, #tpu.memory_space<vmem>>, vector<8x256xf32>
      tpu.vector_store %arg9[%c0_34, %c0_35], %39 {strides = array<i32>} : memref<8x256xf32, #tpu.memory_space<vmem>>, vector<8x256xf32>,
    } else {
    }
    %c0 = arith.constant 0 : index
    %c0_1 = arith.constant 0 : index
    %3 = vector.load %arg6[%c0, %c0_1] : memref<8x256xbf16, #tpu.memory_space<vmem>>, vector<8x256xbf16>
    %c0_2 = arith.constant 0 : index
    %c0_3 = arith.constant 0 : index
    %4 = vector.load %arg3[%c0_2, %c0_3] : memref<8x256xbf16, #tpu.memory_space<vmem>>, vector<8x256xbf16>
    %cst = arith.constant dense<0.000000e+00> : vector<8x8xf32>
    %5 = tpu.matmul %3, %4, %cst {dimension_numbers = #tpu.dot_dimension_numbers<[1], [1], [0], [0], [0, 0, 1, 0], [], []>} : vector<8x256xbf16>, vector<8x256xbf16>, vector<8x8xf32> -> vector<8x8xf32>
    %c0_4 = arith.constant 0 : index
    %c0_5 = arith.constant 0 : index
    %6 = vector.load %arg7[%c0_4, %c0_5] : memref<8x1xf32, #tpu.memory_space<vmem>>, vector<8x1xf32>
    %cst_6 = arith.constant dense<0xFF800000> : vector<8xf32>
    %7 = vector.multi_reduction <maximumf>, %5, %cst_6 [1] : vector<8x8xf32> to vector<8xf32>
    %8 = vector.shape_cast %7 : vector<8xf32> to vector<8x1xf32>
    %9 = arith.maximumf %6, %8 : vector<8x1xf32>
    %10 = arith.subf %6, %9 : vector<8x1xf32>
    %11 = math.exp %10 : vector<8x1xf32>
    %12 = vector.broadcast %9 : vector<8x1xf32> to vector<8x8xf32>
    %13 = arith.subf %5, %12 : vector<8x8xf32>
    %14 = math.exp %13 : vector<8x8xf32>
    %cst_7 = arith.constant dense<0.000000e+00> : vector<8xf32>
    %15 = vector.multi_reduction <add>, %14, %cst_7 [1] : vector<8x8xf32> to vector<8xf32>
    %16 = vector.shape_cast %15 : vector<8xf32> to vector<8x1xf32>
    %17 = arith.truncf %14 : vector<8x8xf32> to vector<8x8xbf16>
    %c0_8 = arith.constant 0 : index
    %c0_9 = arith.constant 0 : index
    %18 = vector.load %arg8[%c0_8, %c0_9] : memref<8x1xf32, #tpu.memory_space<vmem>>, vector<8x1xf32>
    %19 = arith.mulf %11, %18 : vector<8x1xf32>
    %20 = arith.addf %19, %16 : vector<8x1xf32>
    %c0_10 = arith.constant 0 : index
    %c0_11 = arith.constant 0 : index
    %21 = vector.load %arg8[%c0_10, %c0_11] : memref<8x1xf32, #tpu.memory_space<vmem>>, vector<8x1xf32>
    tpu.vector_store %arg8[%c0_10, %c0_11], %20 {strides = array<i32>} : memref<8x1xf32, #tpu.memory_space<vmem>>, vector<8x1xf32>,
    %c0_12 = arith.constant 0 : index
    %c0_13 = arith.constant 0 : index
    %22 = vector.load %arg9[%c0_12, %c0_13] : memref<8x256xf32, #tpu.memory_space<vmem>>, vector<8x256xf32>
    %23 = vector.broadcast %11 : vector<8x1xf32> to vector<8x256xf32>
    %24 = arith.mulf %23, %22 : vector<8x256xf32>
    %c0_14 = arith.constant 0 : index
    %c0_15 = arith.constant 0 : index
    %25 = vector.load %arg4[%c0_14, %c0_15] : memref<8x256xbf16, #tpu.memory_space<vmem>>, vector<8x256xbf16>
    %cst_16 = arith.constant dense<0.000000e+00> : vector<8x256xf32>
    %26 = tpu.matmul %17, %25, %cst_16 {dimension_numbers = #tpu.dot_dimension_numbers<[1], [0], [0], [1], [0, 0, 1, 1], [], []>} : vector<8x8xbf16>, vector<8x256xbf16>, vector<8x256xf32> -> vector<8x256xf32>
    %27 = arith.addf %24, %26 : vector<8x256xf32>
    %c0_17 = arith.constant 0 : index
    %c0_18 = arith.constant 0 : index
    %28 = vector.load %arg9[%c0_17, %c0_18] : memref<8x256xf32, #tpu.memory_space<vmem>>, vector<8x256xf32>
    tpu.vector_store %arg9[%c0_17, %c0_18], %27 {strides = array<i32>} : memref<8x256xf32, #tpu.memory_space<vmem>>, vector<8x256xf32>,
    %c0_19 = arith.constant 0 : index
    %c0_20 = arith.constant 0 : index
    %29 = vector.load %arg7[%c0_19, %c0_20] : memref<8x1xf32, #tpu.memory_space<vmem>>, vector<8x1xf32>
    tpu.vector_store %arg7[%c0_19, %c0_20], %9 {strides = array<i32>} : memref<8x1xf32, #tpu.memory_space<vmem>>, vector<8x1xf32>,
    %c0_i32_21 = arith.constant 0 : i32
    %30 = arith.cmpi eq, %arg1, %c0_i32_21 : i32
    %31 = arith.extui %30 : i1 to i32
    %c0_i32_22 = arith.constant 0 : i32
    %32 = arith.cmpi ne, %31, %c0_i32_22 : i32
    scf.if %32 {
      %c0_23 = arith.constant 0 : index
      %c0_24 = arith.constant 0 : index
      %33 = vector.load %arg9[%c0_23, %c0_24] : memref<8x256xf32, #tpu.memory_space<vmem>>, vector<8x256xf32>
      %c0_25 = arith.constant 0 : index
      %c0_26 = arith.constant 0 : index
      %34 = vector.load %arg8[%c0_25, %c0_26] : memref<8x1xf32, #tpu.memory_space<vmem>>, vector<8x1xf32>
      %35 = tpu.reciprocal %34 {approx = true} : vector<8x1xf32> -> vector<8x1xf32>
      %36 = vector.broadcast %35 : vector<8x1xf32> to vector<8x256xf32>
      %37 = arith.mulf %33, %36 : vector<8x256xf32>
      %c0_27 = arith.constant 0 : index
      %c0_28 = arith.constant 0 : index
      %38 = vector.load %arg5[%c0_27, %c0_28] : memref<8x256xf32, #tpu.memory_space<vmem>>, vector<8x256xf32>
      tpu.vector_store %arg5[%c0_27, %c0_28], %37 {strides = array<i32>} : memref<8x256xf32, #tpu.memory_space<vmem>>, vector<8x256xf32>,
    } else {
    }
    return
  }
  func.func @transform_0(%arg0: i32, %arg1: i32) -> (i32, i32) {
    %c0_i32 = arith.constant 0 : i32
    %c0_i32_0 = arith.constant 0 : i32
    return %arg0, %c0_i32 : i32, i32
  }
  func.func @transform_1(%arg0: i32, %arg1: i32) -> (i32, i32) {
    %c0_i32 = arith.constant 0 : i32
    %c0_i32_0 = arith.constant 0 : i32
    return %arg1, %c0_i32 : i32, i32
  }
  func.func @transform_2(%arg0: i32, %arg1: i32) -> (i32, i32) {
    %c0_i32 = arith.constant 0 : i32
    %c0_i32_0 = arith.constant 0 : i32
    return %arg1, %c0_i32 : i32, i32
  }
  func.func @transform_3(%arg0: i32, %arg1: i32) -> (i32, i32) {
    %c0_i32 = arith.constant 0 : i32
    %c0_i32_0 = arith.constant 0 : i32
    return %arg0, %c0_i32 : i32, i32
  }
}

</mosaic_0001>

<bundles_post_ra>
// kernel: tpu_custom_call.1
= control target key start
LH: loop header
LB: loop body
LE: loop exit
PB: predicated region body
PF: predicated region fallthrough
CT: control target
= control target key end

     0   :  { %8 = vsyncpa [#allocation7], 0  ;;  %s452_s0 = inlined_call_operand.hbm [shape: bf16[8,256], index: 0, kind: input, shape index: {}]   ;;  %s453_s1 = inlined_call_operand.hbm [shape: bf16[8,256], index: 1, kind: input, shape index: {}]   ;;  %s454_s2 = inlined_call_operand.hbm [shape: bf16[8,256], index: 2, kind: input, shape index: {}]   ;;  %s455_s3 = inlined_call_operand.hbm [shape: f32[8,256], index: 3, kind: output, shape index: {}]  }
   0x1   :  { %9 = vsyncpa [#allocation10], 0 }
   0x2   :  { %10 = vsyncpa [#allocation8], 0  ;;  %s370_s12 = smov [#allocation9]   ;;  %s371_s14 = smov [#allocation6]  }
   0x3   :  { %s27_s13 = sshll.u32 %s370_s12, 4  ;;  %s17_s15 = sshll.u32 %s371_s14, 4  ;;  %s28_s13 = int_to_ptr.vmem [resolvable:$true] %s27_s13  ;;  %s18_s15 = int_to_ptr.vmem [resolvable:$true] %s17_s15 }
   0x4   :  { %s276_s18 = scalar_lea.hbm %s453_s1, 128 }
   0x5   :  { %p277_p0 = scmp.ne.s32.totalorder %s453_s1, %s276_s18  ;;  %p280_p1 = scmp.lt.u32.totalorder %s276_s18, %s453_s1 }
   0x7   :  { %p282_p2 = pnand %p280_p1, %p277_p0 }
   0x9   :  { %285 = shalt.err (!%p282_p2)
}
   0xa   :  { %s286_s23 = scalar_lea.vmem %s28_s13, 128  ;;  %p291_p4 = scmp.lt.s32.totalorder %s28_s13, %s28_s13 }
   0xb   :  { %p287_p3 = scmp.ne.s32.totalorder %s28_s13, %s286_s23  ;;  %p292_p5 = scmp.lt.s32.totalorder %s286_s23, %s286_s23 }
   0xd   :  { %p293_p6 = por %p292_p5, %p291_p4 }
   0xf   :  { %p294_p7 = pnand %p293_p6, %p287_p3 }
  0x11   :  { %297 = shalt.err (!%p294_p7)
}
  0x12   :  { %30 = dma.hbm_to_vmem [thread:$0]  %s453_s1, 128, %s28_s13, [#allocation10]  }
  0x13   :  { %s298_s28 = scalar_lea.hbm %s452_s0, 128 }
  0x14   :  { %p299_p8 = scmp.ne.s32.totalorder %s452_s0, %s298_s28  ;;  %p302_p9 = scmp.lt.u32.totalorder %s298_s28, %s452_s0 }
  0x16   :  { %p304_p10 = pnand %p302_p9, %p299_p8 }
  0x18   :  { %307 = shalt.err (!%p304_p10)
}
  0x19   :  { %s308_s6 = scalar_lea.vmem %s18_s15, 128  ;;  %p313_p12 = scmp.lt.s32.totalorder %s18_s15, %s18_s15 }
  0x1a   :  { %p309_p11 = scmp.ne.s32.totalorder %s18_s15, %s308_s6  ;;  %p314_p13 = scmp.lt.s32.totalorder %s308_s6, %s308_s6 }
  0x1c   :  { %p315_p0 = por %p314_p13, %p313_p12 }
  0x1e   :  { %p316_p1 = pnand %p315_p0, %p309_p11 }
  0x20   :  { %319 = shalt.err (!%p316_p1)
}
  0x21   :  { %20 = dma.hbm_to_vmem [thread:$0]  %s452_s0, 128, %s18_s15, [#allocation7]  }
  0x22   :  { %s372_s8 = smov [#allocation11]   ;;  %s320_s12 = scalar_lea.hbm %s454_s2, 128 }
  0x23   :  { %s37_s9 = sshll.u32 %s372_s8, 4  ;;  %p321_p2 = scmp.ne.s32.totalorder %s454_s2, %s320_s12  ;;  %s38_s9 = int_to_ptr.vmem [resolvable:$true] %s37_s9 }
  0x24   :  { %p324_p3 = scmp.lt.u32.totalorder %s320_s12, %s454_s2 }
  0x26   :  { %p326_p4 = pnand %p324_p3, %p321_p2 }
  0x28   :  { %329 = shalt.err (!%p326_p4)
}
  0x29   :  { %s330_s18 = scalar_lea.vmem %s38_s9, 128  ;;  %p335_p6 = scmp.lt.s32.totalorder %s38_s9, %s38_s9 }
  0x2a   :  { %p331_p5 = scmp.ne.s32.totalorder %s38_s9, %s330_s18  ;;  %p336_p7 = scmp.lt.s32.totalorder %s330_s18, %s330_s18 }
  0x2c   :  { %p337_p8 = por %p336_p7, %p335_p6 }
  0x2e   :  { %p338_p9 = pnand %p337_p8, %p331_p5 }
  0x30   :  { %341 = shalt.err (!%p338_p9)
}
  0x31   :  { %40 = dma.hbm_to_vmem [thread:$0]  %s454_s2, 128, %s38_s9, [#allocation10]  }
  0x32   :  { %364 = dma.done.wait [#allocation7], 128  }
  0x33   :  { %365 = vsyncadd [#allocation7], 4294967168 }
  0x34   :  { %366 = dma.done.wait [#allocation10], 256  }
  0x35   :  { %367 = vsyncadd [#allocation10], 4294967040  ;;  %v63_v0 = vld [vmem:[#allocation9] sm:$0xff]  ;;  %v55_v1 = vld [vmem:[#allocation6] sm:$0xff]  ;;  %vm57_vm0 = vcmask 7168   ;;  %v373_v6 = vmov -inf  }
  0x36   :  { %v250_v2 = vcombine.high %v63_v0, %v63_v0  ;;  %v249_v3 = vcombine.low %v63_v0, %v63_v0  ;;  %v248_v4 = vcombine.high %v55_v1, %v55_v1  ;;  %v247_v5 = vcombine.low %v55_v1, %v55_v1  ;;  %58 = vst.msk [vmem:[#allocation3] sm:$0xff] %vm57_vm0, %v373_v6  ;;  %v153_v18 = vld [vmem:[#allocation11] sm:$0xff]  ;;  %s376_s2 = smov [#allocation12]  }
  0x37   :  { %vm119_vm1 = vcmask 64512   ;;  %v374_v12 = vmov 0   ;;  %v375_v13 = vmov 0.0   ;;  %vm162_vm2 = vcmask 1043456   ;;  %s237_s19 = sshll.u32 %s376_s2, 4  ;;  %s238_s19 = int_to_ptr.vmem [resolvable:$true] %s237_s19 }
  0x38   :  { %78 = vmatprep.subr.bf16.mxu0 %v250_v2  ;;  %110 = vmatprep.mubr.bf16.mxu0 %v248_v4  ;;  %59 = vst.msk [vmem:[#allocation4] sm:$0xff] %vm57_vm0, %v375_v13  ;;  %v252_v19 = vcombine.high %v153_v18, %v153_v18  ;;  %v251_v20 = vcombine.low %v153_v18, %v153_v18  ;;  %s342_s20 = scalar_lea.vmem %s238_s19, 256  ;;  %p347_p11 = scmp.lt.s32.totalorder %s238_s19, %s238_s19 }
  0x39   :  { %79 = vmatpush1.bf16.xpose.msra.mxu0 %v249_v3  ;;  %262 = vset.pattern.permute.xlu0 %v374_v12  ;;  %p343_p10 = scmp.ne.s32.totalorder %s238_s19, %s342_s20  ;;  %p348_p12 = scmp.lt.s32.totalorder %s342_s20, %s342_s20 }
  0x3a   :  { %201 = vmatprep.mubr.bf16.mxu1 %v374_v12  ;;  %263 = vset.pattern.permute.xlu1 %v374_v12  ;;  %v164_v21 = vsel %vm162_vm2, %v251_v20, 0 }
  0x3b   :  { %253 = vmatprep.subr.msk.bf16.mxu1 %vm162_vm2, %v252_v19  ;;  %p349_p13 = por %p348_p12, %p347_p11 }
  0x3c   :  { %170 = vmatpush1.bf16.msra.mxu1 %v164_v21 }
  0x3d   :  { %v118_v14 = vld [vmem:[#allocation3] sm:$0xff]  ;;  %p350_p0 = pnand %p349_p13, %p343_p10 }
  0x3f   :  { %v139_v30 = vld [vmem:[#allocation4] sm:$0xff] }
  0x40   :  { %111 = vmatmul.mubr.bf16.vlgmr.msra.gmra.mrb[0].mxu0 %v247_v5 }
 0x113   :  { %v112_v7 = vpop.f32.mrb[0].mxu0 }
 0x114   :  { %v114_v8 = vpop.f32.mrb[1].mxu0  ;;  %v120_v9 = vsel %vm119_vm1, %v112_v7, -inf }
 0x115   :  { %121 = vmax.xlane.f32.xlu0 %v120_v9  ;;  %v115_v10 = vpop.f32.mrb[2].mxu0 }
 0x116   :  { %v116_v11 = vpop.f32.mrb[3].mxu0 }
 0x1a2   :  { %v122_v15 = vpop.xlane.xlu0 %121 }
 0x1a3   :  { %v123_v16 = vmax.f32 %v118_v14, %v122_v15 }
 0x1a5   :  { %v124_v17 = vsub.f32 %v118_v14, %v123_v16  ;;  %214 = vst.msk [vmem:[#allocation3] sm:$0xff] %vm57_vm0, %v123_v16  ;;  %129 = vperm.xlu0 %262, %v123_v16  }
 0x1a7   :  { %v125_v28 = vmul.f32 1.442695, %v124_v17 }
 0x224   :  { %v130_v22 = vpop.permute.xlu0 %129 }
 0x225   :  { %v132_v23 = vsub.f32 %v112_v7, %v130_v22 }
 0x227   :  { %v133_v24 = vmul.f32 1.442695, %v132_v23 }
 0x229   :  { %270 = vpow2.f32 %v133_v24 }
 0x22a   :  { %272 = vpow2.f32 %v125_v28 }
 0x233   :  { %v271_v25 = vpop.eup %270 }
 0x234   :  { %v135_v26 = vsel %vm119_vm1, %v271_v25, 0.0  ;;  %v138_v27 = vpack.c.bf16 %v271_v25, %v271_v25  ;;  %v273_v29 = vpop.eup %272 }
 0x235   :  { %136 = vadd.xlane.f32.xlu1 %v135_v26  ;;  %v140_v31 = vmul.f32 %v273_v29, %v139_v30 }
 0x236   :  { %254 = vmatmul.mubr.msk.bf16.vlgmr.msra.gmra.mrb[0].mxu1 %vm119_vm1, %v138_v27 }
 0x246   :  { %148 = vperm.xlu1 %263, %v273_v29  }
 0x2c2   :  { %v137_v32 = vpop.xlane.xlu1 %136 }
 0x2c3   :  { %v141_v33 = vadd.f32 %v140_v31, %v137_v32 }
 0x2c5   :  { %143 = vst.msk [vmem:[#allocation4] sm:$0xff] %vm57_vm0, %v141_v33 }
 0x2c6   :  { %v149_v40 = vpop.permute.xlu1 %148 }
 0x2c7   :  { %v151_v41 = vmul.f32 0.0, %v149_v40 }
 0x2cc   :  { %v220_v34 = vld [vmem:[#allocation4] sm:$0xff] }
 0x2cd   :  { %274 = vrcp.f32 %v220_v34 }
 0x2d7   :  { %v275_v35 = vpop.eup %274 }
 0x2d8   :  { %224 = vperm.xlu1 %263, %v275_v35  }
 0x309   :  { %v203_v36 = vpop.f32.mrb[0].mxu1 }
 0x30a   :  { %v205_v37 = vpop.f32.mrb[1].mxu1  ;;  %v210_v42 = vadd.f32 %v203_v36, %v151_v41 }
 0x30b   :  { %v207_v38 = vpop.f32.mrb[2].mxu1  ;;  %v211_v43 = vadd.f32 %v205_v37, %v151_v41 }
 0x30c   :  { %v208_v39 = vpop.f32.mrb[3].mxu1 }
 0x357   :  { %v225_v44 = vpop.permute.xlu1 %224 }
 0x358   :  { %v227_v45 = vmul.f32 %v225_v44, %v210_v42  ;;  %v228_v46 = vmul.f32 %v225_v44, %v211_v43 }
 0x35a   :  { %229 = vst [vmem:[#allocation12] sm:$0xff] %v227_v45  ;;  %230 = vst [vmem:[#allocation12 + $0x8] sm:$0xff] %v228_v46 }
 0x35b   :  { %353 = shalt.err (!%p350_p0)
}
 0x35c   :  { %s354_s23 = scalar_lea.hbm %s455_s3, 256 }
 0x35d   :  { %p355_p1 = scmp.ne.s32.totalorder %s455_s3, %s354_s23  ;;  %p358_p2 = scmp.lt.u32.totalorder %s354_s23, %s455_s3 }
 0x35f   :  { %p360_p3 = pnand %p358_p2, %p355_p1 }
 0x361   :  { %363 = shalt.err (!%p360_p3)
}
 0x362   :  { %240 = dma.vmem_to_hbm [thread:$0]  %s238_s19, 256, %s455_s3, [#allocation8]  }
 0x363   :  { %368 = dma.done.wait [#allocation8], 256  }
 0x364   :  { %369 = vsyncadd [#allocation8], 4294967040 }
 0x365   :  { %244 = vsyncpa [#allocation7], 1 }
 0x366   :  { %245 = vsyncpa [#allocation10], 1 }
 0x367   :  { %246 = vsyncpa [#allocation8], 1 }

</bundles_post_ra>
